<compile_context>
chip_gen: v7x
topology: tpu7x:2x2x1
jax: 0.10.0
libtpu: 0.0.40
codegen_flags: <defaults>
</compile_context>

<pallas_src>
import functools
import math

import jax
import jax.numpy as jnp
from jax.experimental import pallas as pl
from jax.experimental.pallas import tpu as pltpu


_VMEM_TILE_BUDGET = 12 * 1024 * 1024   # double-buffered operand budget (bytes)
_VMEM_LIMIT_BYTES = 32 * 1024 * 1024   # scoped VMEM limit handed to Mosaic


def _round_up(x, m):
    return ((x + m - 1) // m) * m


def _sublane(*dtypes):
    """Second-minor alignment (8 for 4-byte, 16 for 2-byte, 32 for 1-byte)."""
    return max(max(8, 32 // jnp.dtype(d).itemsize) for d in dtypes)


# ----------------------------- kernels ------------------------------------- #


def _add_kernel(x_ref, w_ref, o_ref):
    # x_ref: (Bt, tS, D), w_ref: (tS, D), o_ref: (Bt, tS, D)
    o_ref[...] = (x_ref[...].astype(o_ref.dtype)
                  + w_ref[...].astype(o_ref.dtype)[None, :, :])


def _concat_kernel(x_ref, w_ref, o_ref):
    # x_ref: (Bt, tS, D), w_ref: (tS, D), o_ref: (Bt, tS, 2*D)
    bt, ts, d = x_ref.shape
    o_ref[:, :, :d] = x_ref[...].astype(o_ref.dtype)
    # With D % 128 == 0 both stores are full-lane slabs; otherwise this one is
    # a correct-but-masked partial store.
    o_ref[:, :, d:] = jnp.broadcast_to(
        w_ref[...].astype(o_ref.dtype)[None, :, :], (bt, ts, d))


def _expand_kernel(idx_ref, w_ref, o_ref, *, clamp):
    # idx_ref: (tR, 1) int32, w_ref: (V, D) full table, o_ref: (tR, D).
    # Embedding gather implemented as a one-hot matmul on the MXU. Exact when
    # the table values are representable at the MXU input precision (e.g. a
    # bf16 table or bf16-representable f32 values).
    tr = idx_ref.shape[0]
    v = w_ref.shape[0]
    idx = jnp.clip(idx_ref[...], -clamp, clamp) + clamp            # (tR, 1)
    onehot = idx == jax.lax.broadcasted_iota(jnp.int32, (tr, v), 1)  # (tR, V)
    o_ref[...] = jnp.dot(
        onehot.astype(jnp.float32), w_ref[...].astype(jnp.float32),
        preferred_element_type=jnp.float32).astype(o_ref.dtype)


# ----------------------------- wrappers ------------------------------------ #


def _select_tiles(B, S, D, x_dtype, w_dtype, out_dtype, out_width_mult):
    """Pick (Bt, tS) so double-buffered x/weight/out tiles fit the VMEM budget."""
    xb = jnp.dtype(x_dtype).itemsize
    wb = jnp.dtype(w_dtype).itemsize
    ob = jnp.dtype(out_dtype).itemsize
    sub = _sublane(x_dtype, w_dtype, out_dtype)

    def step_bytes(bt, ts):
        # Pallas double-buffers every BlockSpec operand.
        return 2 * ts * D * (bt * xb + wb + bt * out_width_mult * ob)

    bt, ts = B, S
    # Shrink the sequence tile first (keeps batch fused into big slabs) ...
    while step_bytes(bt, ts) > _VMEM_TILE_BUDGET and ts > sub:
        ts = max(sub, _round_up(ts // 2, sub))
    # ... then the batch tile.
    while step_bytes(bt, ts) > _VMEM_TILE_BUDGET and bt > 1:
        bt = max(1, bt // 2)

    # v7x has two TensorCores per chip: keep >=2 parallel grid steps whenever
    # there is enough work for the split to pay off (> ~1 MiB of input).
    if pl.cdiv(B, bt) * pl.cdiv(S, ts) == 1 and B * S * D * xb > (1 << 20):
        if S >= 2 * sub:
            ts = _round_up(pl.cdiv(S, 2), sub)
        elif B >= 2:
            bt = pl.cdiv(B, 2)
    return int(bt), int(ts)


def _expand_forward(x, weight):
    # F.embedding(clamp(x, -n, n) + n, weight), weight: (2*n + 1, D).
    V, D = weight.shape
    n = (V - 1) // 2
    out_dtype = weight.dtype

    orig_shape = x.shape
    R = int(math.prod(orig_shape)) if orig_shape else 1
    idx = x.reshape(R, 1).astype(jnp.int32)

    sub = _sublane(weight.dtype)
    ob = jnp.dtype(out_dtype).itemsize
    wb = jnp.dtype(weight.dtype).itemsize
    fixed = 2 * V * D * wb  # resident table (constant block index, DMA'd once)

    def step_bytes(tr):
        return 2 * tr * (4 + D * ob) + tr * V * 4 + fixed

    tR = R
    while step_bytes(tR) > _VMEM_TILE_BUDGET and tR > sub:
        tR = max(sub, _round_up(tR // 2, sub))
    # TODO(synk): for very large tables ((2n+1)*D beyond the VMEM budget) the
    # vocab axis would also need tiling (or a true DMA gather); position
    # embedding tables are small so this is not handled here.

    out = pl.pallas_call(
        functools.partial(_expand_kernel, clamp=n),
        out_shape=jax.ShapeDtypeStruct((R, D), out_dtype),
        grid=(pl.cdiv(R, tR),),
        in_specs=[
            pl.BlockSpec((tR, 1), lambda r: (r, 0)),
            pl.BlockSpec((V, D), lambda r: (0, 0)),   # whole table, DMA'd once
        ],
        out_specs=pl.BlockSpec((tR, D), lambda r: (r, 0)),
        compiler_params=pltpu.CompilerParams(
            dimension_semantics=("parallel",),
            vmem_limit_bytes=_VMEM_LIMIT_BYTES),
    )(idx, weight)
    return out.reshape(orig_shape + (D,))


def position_embedding_forward(x, weight, mode="MODE_ADD"):
    """Pallas implementation of PositionEmbedding.forward."""
    if mode == "MODE_EXPAND":
        return _expand_forward(x, weight)
    if mode not in ("MODE_ADD", "MODE_CONCAT"):
        raise NotImplementedError("Unknown mode: %s" % mode)

    B, S, D = x.shape
    if S > weight.shape[0]:
        raise ValueError("seq_len exceeds num_embeddings")
    out_dtype = jnp.promote_types(x.dtype, weight.dtype)
    concat = mode == "MODE_CONCAT"
    out_d = 2 * D if concat else D

    Bt, tS = _select_tiles(B, S, D, x.dtype, weight.dtype, out_dtype,
                           2 if concat else 1)

    # weight is normally passed unsliced: the BlockSpec row index performs the
    # [:S] slice. Only if the seq tile equals S but S is not sublane-aligned
    # (and != num_embeddings) do we pre-slice so the weight block is full-extent.
    sub = _sublane(x.dtype, weight.dtype, out_dtype)
    w_in = weight if (tS % sub == 0 or tS == weight.shape[0]) else weight[:S, :]

    kernel = _concat_kernel if concat else _add_kernel

    return pl.pallas_call(
        kernel,
        out_shape=jax.ShapeDtypeStruct((B, S, out_d), out_dtype),
        # Seq tiles outermost, batch tiles innermost: the weight block index
        # only depends on the seq tile, so it stays resident across the inner
        # batch loop (no redundant weight DMAs).
        grid=(pl.cdiv(S, tS), pl.cdiv(B, Bt)),
        in_specs=[
            pl.BlockSpec((Bt, tS, D), lambda s, b: (b, s, 0)),
            pl.BlockSpec((tS, D), lambda s, b: (s, 0)),
        ],
        out_specs=pl.BlockSpec((Bt, tS, out_d), lambda s, b: (b, s, 0)),
        compiler_params=pltpu.CompilerParams(
            dimension_semantics=("parallel", "parallel"),
            vmem_limit_bytes=_VMEM_LIMIT_BYTES),
    )(x, w_in)


def init_position_embedding_weight(key, num_embeddings, embedding_dim,
                                   dtype=jnp.float32):
    """xavier_normal_ for a 2D (num_embeddings, embedding_dim) parameter:
    std = gain * sqrt(2 / (fan_in + fan_out)), gain = 1."""
    std = math.sqrt(2.0 / (num_embeddings + embedding_dim))
    return std * jax.random.normal(key, (num_embeddings, embedding_dim), dtype)


if __name__ == "__main__":
    key = jax.random.PRNGKey(0)
    k_x, k_w, k_we, k_i = jax.random.split(key, 4)

    batch, seq_len, embedding_dim = 2, 8, 128
    num_embeddings = 16  # >= seq_len, as the module assumes

    x = jax.random.normal(k_x, (batch, seq_len, embedding_dim), jnp.float32)
    weight = init_position_embedding_weight(k_w, num_embeddings, embedding_dim)

    # MODE_ADD (module default)
    out_add = jax.block_until_ready(
        position_embedding_forward(x, weight, mode="MODE_ADD"))
    ref_add = x + weight[:seq_len, :][None, :, :]
    assert out_add.shape == (batch, seq_len, embedding_dim)
    assert jnp.allclose(out_add, ref_add, atol=1e-6, rtol=1e-6)

    # MODE_CONCAT
    out_cat = jax.block_until_ready(
        position_embedding_forward(x, weight, mode="MODE_CONCAT"))
    ref_cat = jnp.concatenate(
        [x, jnp.broadcast_to(weight[:seq_len, :][None, :, :], x.shape)], axis=-1)
    assert out_cat.shape == (batch, seq_len, 2 * embedding_dim)
    assert jnp.allclose(out_cat, ref_cat, atol=1e-6, rtol=1e-6)

    # MODE_EXPAND (clamped integer-index embedding gather)
    w_exp = init_position_embedding_weight(
        k_we, 2 * num_embeddings + 1, embedding_dim)
    # Round the table to bf16-representable values so the one-hot-matmul gather
    # check is exact regardless of the MXU's f32 pass count.
    w_exp = w_exp.astype(jnp.bfloat16).astype(jnp.float32)
    idx = jax.random.randint(k_i, (batch, seq_len),
                             -num_embeddings - 3, num_embeddings + 4,
                             dtype=jnp.int32)
    out_exp = jax.block_until_ready(
        position_embedding_forward(idx, w_exp, mode="MODE_EXPAND"))
    ref_exp = w_exp[jnp.clip(idx, -num_embeddings, num_embeddings)
                    + num_embeddings]
    assert out_exp.shape == (batch, seq_len, embedding_dim)
    assert jnp.allclose(out_exp, ref_exp, atol=1e-6, rtol=1e-6)

    print("KERNEL_OK")
</pallas_src>

<mosaic_0001>
module attributes {stable_mosaic.version = 11 : i64} {
  func.func @_add_kernel(%arg0: i32, %arg1: i32, %arg2: memref<2x8x128xf32, #tpu.memory_space<vmem>>, %arg3: memref<8x128xf32, #tpu.memory_space<vmem>>, %arg4: memref<2x8x128xf32, #tpu.memory_space<vmem>>) attributes {dimension_semantics = [#tpu.dimension_semantics<parallel>, #tpu.dimension_semantics<parallel>], iteration_bounds = array<i64: 1, 1>, scalar_prefetch = 0 : i64, scratch_operands = 0 : i64, tpu.core_type = #tpu.core_type<tc>, window_params = [{transform_indices = @transform_0, window_bounds = array<i64: 2, 8, 128>}, {transform_indices = @transform_1, window_bounds = array<i64: 8, 128>}, {transform_indices = @transform_2, window_bounds = array<i64: 2, 8, 128>}]} {
    %c0 = arith.constant 0 : index
    %c0_0 = arith.constant 0 : index
    %c0_1 = arith.constant 0 : index
    %0 = vector.load %arg2[%c0, %c0_0, %c0_1] : memref<2x8x128xf32, #tpu.memory_space<vmem>>, vector<2x8x128xf32>
    %c0_2 = arith.constant 0 : index
    %c0_3 = arith.constant 0 : index
    %1 = vector.load %arg3[%c0_2, %c0_3] : memref<8x128xf32, #tpu.memory_space<vmem>>, vector<8x128xf32>
    %2 = vector.shape_cast %1 : vector<8x128xf32> to vector<1x8x128xf32>
    %3 = vector.broadcast %2 : vector<1x8x128xf32> to vector<2x8x128xf32>
    %4 = arith.addf %0, %3 : vector<2x8x128xf32>
    %c0_4 = arith.constant 0 : index
    %c0_5 = arith.constant 0 : index
    %c0_6 = arith.constant 0 : index
    %5 = vector.load %arg4[%c0_4, %c0_5, %c0_6] : memref<2x8x128xf32, #tpu.memory_space<vmem>>, vector<2x8x128xf32>
    tpu.vector_store %arg4[%c0_4, %c0_5, %c0_6], %4 {strides = array<i32>} : memref<2x8x128xf32, #tpu.memory_space<vmem>>, vector<2x8x128xf32>,
    return
  }
  func.func @transform_0(%arg0: i32, %arg1: i32) -> (i32, i32, i32) {
    %c0_i32 = arith.constant 0 : i32
    %c0_i32_0 = arith.constant 0 : i32
    return %arg1, %arg0, %c0_i32 : i32, i32, i32
  }
  func.func @transform_1(%arg0: i32, %arg1: i32) -> (i32, i32) {
    %c0_i32 = arith.constant 0 : i32
    %c0_i32_0 = arith.constant 0 : i32
    return %arg0, %c0_i32 : i32, i32
  }
  func.func @transform_2(%arg0: i32, %arg1: i32) -> (i32, i32, i32) {
    %c0_i32 = arith.constant 0 : i32
    %c0_i32_0 = arith.constant 0 : i32
    return %arg1, %arg0, %c0_i32 : i32, i32, i32
  }
}

</mosaic_0001>

<bundles_post_ra>
// kernel: tpu_custom_call.1
= control target key start
LH: loop header
LB: loop body
LE: loop exit
PB: predicated region body
PF: predicated region fallthrough
CT: control target
= control target key end

     0   :  { %7 = vsyncpa [#allocation3], 0  ;;  %s205_s0 = inlined_call_operand.hbm [shape: f32[2,8,128], index: 0, kind: input, shape index: {}]   ;;  %s206_s1 = inlined_call_operand.hbm [shape: f32[16,128], index: 1, kind: input, shape index: {}]   ;;  %s207_s2 = inlined_call_operand.hbm [shape: f32[2,8,128], index: 2, kind: output, shape index: {}]  }
   0x1   :  { %8 = vsyncpa [#allocation6], 0 }
   0x2   :  { %9 = vsyncpa [#allocation4], 0  ;;  %s140_s9 = smov [#allocation2]   ;;  %s68_s13 = scalar_lea.hbm %s205_s0, 256 }
   0x3   :  { %s15_s10 = sshll.u32 %s140_s9, 4  ;;  %p69_p0 = scmp.ne.s32.totalorder %s205_s0, %s68_s13  ;;  %s16_s10 = int_to_ptr.vmem [resolvable:$true] %s15_s10 }
   0x4   :  { %p72_p1 = scmp.lt.u32.totalorder %s68_s13, %s205_s0 }
   0x6   :  { %p74_p2 = pnand %p72_p1, %p69_p0 }
   0x8   :  { %77 = shalt.err (!%p74_p2)
}
   0x9   :  { %s78_s18 = scalar_lea.vmem %s16_s10, 256  ;;  %p83_p4 = scmp.lt.s32.totalorder %s16_s10, %s16_s10 }
   0xa   :  { %p79_p3 = scmp.ne.s32.totalorder %s16_s10, %s78_s18  ;;  %p84_p5 = scmp.lt.s32.totalorder %s78_s18, %s78_s18 }
   0xc   :  { %p85_p6 = por %p84_p5, %p83_p4 }
   0xe   :  { %p86_p7 = pnand %p85_p6, %p79_p3 }
  0x10   :  { %89 = shalt.err (!%p86_p7)
}
  0x11   :  { %s141_s19 = smov 128   ;;  %s142_s20 = smov 8  }
  0x12   :  { %21 = dma.hbm_to_vmem [thread:$0]  %s205_s0, 256, %s16_s10, [#allocation3], %s141_s19, %s141_s19, %s142_s20  }
  0x13   :  { %s143_s23 = smov [#allocation5]   ;;  %s90_s27 = scalar_lea.hbm %s206_s1, 128 }
  0x14   :  { %s28_s24 = sshll.u32 %s143_s23, 4  ;;  %p91_p8 = scmp.ne.s32.totalorder %s206_s1, %s90_s27  ;;  %s29_s24 = int_to_ptr.vmem [resolvable:$true] %s28_s24 }
  0x15   :  { %s92_s4 = scalar_lea.hbm %s206_s1, 256  ;;  %p94_p10 = scmp.lt.u32.totalorder %s90_s27, %s206_s1 }
  0x16   :  { %p93_p9 = scmp.lt.u32.totalorder %s92_s4, %s90_s27 }
  0x18   :  { %p95_p11 = por %p94_p10, %p93_p9 }
  0x1a   :  { %p96_p12 = pnand %p95_p11, %p91_p8 }
  0x1c   :  { %99 = shalt.err (!%p96_p12)
}
  0x1d   :  { %s100_s0 = scalar_lea.vmem %s29_s24, 128  ;;  %p105_p0 = scmp.lt.s32.totalorder %s29_s24, %s29_s24 }
  0x1e   :  { %p101_p13 = scmp.ne.s32.totalorder %s29_s24, %s100_s0  ;;  %p106_p1 = scmp.lt.s32.totalorder %s100_s0, %s100_s0 }
  0x20   :  { %p107_p2 = por %p106_p1, %p105_p0 }
  0x22   :  { %p108_p3 = pnand %p107_p2, %p101_p13 }
  0x24   :  { %111 = shalt.err (!%p108_p3)
}
  0x25   :  { %31 = dma.hbm_to_vmem [thread:$0]  %s206_s1, 128, %s29_s24, [#allocation6]  }
  0x26   :  { %134 = dma.done.wait [#allocation3], 256  }
  0x27   :  { %135 = vsyncadd [#allocation3], 4294967040 }
  0x28   :  { %136 = dma.done.wait [#allocation6], 128  }
  0x29   :  { %137 = vsyncadd [#allocation6], 4294967168  ;;  %s144_s9 = smov [#allocation7]   ;;  %v38_v0 = vld [vmem:[#allocation2] sm:$0xff]  ;;  %v40_v1 = vld [vmem:[#allocation5] sm:$0xff] }
  0x2a   :  { %s50_s10 = sshll.u32 %s144_s9, 4  ;;  %v39_v2 = vld [vmem:[#allocation2 + $0x8] sm:$0xff]  ;;  %v41_v3 = vadd.f32 %v40_v1, %v38_v0  ;;  %s51_s10 = int_to_ptr.vmem [resolvable:$true] %s50_s10 }
  0x2b   :  { %v42_v4 = vadd.f32 %v40_v1, %v39_v2  ;;  %s112_s11 = scalar_lea.vmem %s51_s10, 256  ;;  %p117_p5 = scmp.lt.s32.totalorder %s51_s10, %s51_s10 }
  0x2c   :  { %43 = vst [vmem:[#allocation7] sm:$0xff] %v41_v3  ;;  %p113_p4 = scmp.ne.s32.totalorder %s51_s10, %s112_s11  ;;  %p118_p6 = scmp.lt.s32.totalorder %s112_s11, %s112_s11 }
  0x2d   :  { %44 = vst [vmem:[#allocation7 + $0x8] sm:$0xff] %v42_v4 }
  0x2e   :  { %p119_p7 = por %p118_p6, %p117_p5 }
  0x30   :  { %p120_p8 = pnand %p119_p7, %p113_p4 }
  0x32   :  { %123 = shalt.err (!%p120_p8)
}
  0x33   :  { %s124_s13 = scalar_lea.hbm %s207_s2, 256 }
  0x34   :  { %p125_p9 = scmp.ne.s32.totalorder %s207_s2, %s124_s13  ;;  %p128_p10 = scmp.lt.u32.totalorder %s124_s13, %s207_s2 }
  0x36   :  { %p130_p11 = pnand %p128_p10, %p125_p9 }
  0x38   :  { %133 = shalt.err (!%p130_p11)
}
  0x39   :  { %56 = dma.vmem_to_hbm [thread:$0]  %s51_s10, 256, %s207_s2, [#allocation4], %s141_s19, %s141_s19, %s142_s20  }
  0x3a   :  { %138 = dma.done.wait [#allocation4], 256  }
  0x3b   :  { %139 = vsyncadd [#allocation4], 4294967040 }
  0x3c   :  { %60 = vsyncpa [#allocation3], 1 }
  0x3d   :  { %61 = vsyncpa [#allocation6], 1 }
  0x3e   :  { %62 = vsyncpa [#allocation4], 1 }

</bundles_post_ra>
